<compile_context>
chip_gen: v6e
topology: v6e:2x2x1
jax: 0.10.0
libtpu: 0.0.40
codegen_flags: <defaults>
</compile_context>

<pallas_src>
import functools
import math

import jax
import jax.numpy as jnp
from jax import lax
from jax.experimental import pallas as pl
from jax.experimental.pallas import tpu as pltpu

# Raise v5e's 16 MiB default scoped VMEM, stay well under v7x's 64 MiB physical.
VMEM_LIMIT_BYTES = 48 * 1024 * 1024


def _tile(dim, pref):
    """Pick a tile size: the full dim if it is small, else `pref` (must divide)."""
    if dim <= pref:
        return dim
    assert dim % pref == 0, f"dim {dim} not divisible by tile {pref}"
    return pref


def _col_blockable(d_model):
    # Selecting q/k/v out of a packed (.., n*d_model) tensor via BlockSpec
    # column-block indices needs the last block dim (d_model) to be a 128-lane
    # multiple (Mosaic (8,128) block-shape rule).  Production d_model sizes
    # (256, 512, 1024, ...) qualify; the tiny unit-test d_model=32 does not.
    return d_model % 128 == 0


# ----------------------------------------------------------------------------
# Kernel 1: tiled, pipelined linear projection  y = x @ W + b
# ----------------------------------------------------------------------------
def _linear_kernel(x_ref, w_ref, b_ref, o_ref, acc_ref):
    @pl.when(pl.program_id(2) == 0)
    def _():
        acc_ref[...] = jnp.zeros_like(acc_ref)

    acc_ref[...] += jnp.dot(
        x_ref[...], w_ref[...], preferred_element_type=jnp.float32
    )

    @pl.when(pl.program_id(2) == pl.num_programs(2) - 1)
    def _():
        o_ref[...] = (acc_ref[...] + b_ref[...].astype(jnp.float32)).astype(
            o_ref.dtype
        )


def linear(x2d, w, b, *, tm=512, tn=512, tk=512):
    """x2d: (M, K), w: (K, N), b: (N,) -> (M, N).  Tiled over (M, N, K)."""
    M, K = x2d.shape
    K2, N = w.shape
    assert K == K2
    tm = _tile(M, tm)
    tn = _tile(N, tn)
    tk = _tile(K, tk)
    grid = (M // tm, N // tn, K // tk)
    # VMEM at 512^3 f32: 2*(tm*tk) + 2*(tk*tn) + 2*(tm*tn) + acc ≈ 7 MiB — well
    # under the explicit 48 MiB limit on every generation (v5e default is only
    # 16 MiB, hence vmem_limit_bytes below).
    return pl.pallas_call(
        _linear_kernel,
        out_shape=jax.ShapeDtypeStruct((M, N), x2d.dtype),
        grid=grid,
        in_specs=[
            pl.BlockSpec((tm, tk), lambda i, j, k: (i, k)),
            pl.BlockSpec((tk, tn), lambda i, j, k: (k, j)),
            pl.BlockSpec((1, tn), lambda i, j, k: (0, j)),
        ],
        out_specs=pl.BlockSpec((tm, tn), lambda i, j, k: (i, j)),
        scratch_shapes=[pltpu.VMEM((tm, tn), jnp.float32)],
        compiler_params=pltpu.CompilerParams(
            dimension_semantics=("parallel", "parallel", "arbitrary"),
            vmem_limit_bytes=VMEM_LIMIT_BYTES,
        ),
    )(x2d, w, b.reshape(1, N))


# ----------------------------------------------------------------------------
# Kernel 2: multi-head scaled dot-product attention, flash-tiled over KV.
#   scores = q k^T / sqrt(d_k); masked_fill(mask==0, -1e9); softmax; p v
# Heads unrolled in-kernel with a per-head (h, tq, d_k) accumulator; the
# lane-dense concat-heads (tq, D) output is assembled only at the final store.
# ----------------------------------------------------------------------------
def _attention_kernel(*refs, h, d_k, sm_scale, causal, has_mask):
    if has_mask:
        q_ref, k_ref, v_ref, mask_ref, o_ref, m_scr, l_scr, acc_scr = refs
    else:
        q_ref, k_ref, v_ref, o_ref, m_scr, l_scr, acc_scr = refs
        mask_ref = None

    qi = pl.program_id(1)
    ki = pl.program_id(2)
    tq = q_ref.shape[1]
    tkv = k_ref.shape[1]

    @pl.when(ki == 0)
    def _():
        m_scr[...] = jnp.full_like(m_scr, -jnp.inf)
        l_scr[...] = jnp.zeros_like(l_scr)
        acc_scr[...] = jnp.zeros_like(acc_scr)

    def process_tile():
        q_all = q_ref[0]      # (tq, D)   heads packed along the last dim
        k_all = k_ref[0]      # (tkv, D)
        v_all = v_ref[0]      # (tkv, D)

        neg = jnp.float32(-1e9)
        keep = None
        if causal:
            # in-kernel causal mask: zero HBM traffic for the mask
            rows = qi * tq + lax.broadcasted_iota(jnp.int32, (tq, tkv), 0)
            cols = ki * tkv + lax.broadcasted_iota(jnp.int32, (tq, tkv), 1)
            keep = cols <= rows
        elif has_mask:
            keep = mask_ref[0] != 0           # hoisted: one compare per KV tile

        for hh in range(h):   # static unroll over heads
            lo, hi = hh * d_k, (hh + 1) * d_k
            q = q_all[:, lo:hi]
            k = k_all[:, lo:hi]
            v = v_all[:, lo:hi]

            # q @ k^T without forming an explicit transpose of K.
            s = lax.dot_general(
                q, k, (((1,), (1,)), ((), ())),
                preferred_element_type=jnp.float32,
            )
            s = s * sm_scale
            if keep is not None:
                s = jnp.where(keep, s, neg)   # masked_fill(mask == 0, -1e9)

            m_prev = m_scr[hh]                                   # (tq, 1)
            m_new = jnp.maximum(m_prev, jnp.max(s, axis=-1, keepdims=True))
            alpha = jnp.exp(m_prev - m_new)                      # (tq, 1)
            p = jnp.exp(s - m_new)                               # (tq, tkv) f32
            l_scr[hh] = alpha * l_scr[hh] + jnp.sum(p, axis=-1, keepdims=True)
            m_scr[hh] = m_new

            pv = lax.dot_general(
                p.astype(v.dtype), v, (((1,), (0,)), ((), ())),
                preferred_element_type=jnp.float32,
            )                                                    # (tq, d_k)
            # per-head in-place accumulator update (no deferred concats)
            acc_scr[hh] = alpha * acc_scr[hh] + pv

    if causal:
        # skip KV tiles that are entirely above the diagonal (fully masked)
        pl.when(ki * tkv <= qi * tq + (tq - 1))(process_tile)
    else:
        process_tile()

    @pl.when(ki == pl.num_programs(2) - 1)
    def _():
        # Exact divide (once per q tile) — approx reciprocal broke tolerance.
        outs = [acc_scr[hh] / l_scr[hh] for hh in range(h)]
        o_ref[0] = jnp.concatenate(outs, axis=-1).astype(o_ref.dtype)


def fused_attention(q, k, v, *, d_model, h, mask=None, causal=False,
                    tq=256, tkv=256, q_col=0, k_col=0, v_col=0):
    """q: (B, Sq, n*D), k/v: (B, Skv, n*D); *_col select the D-wide column block.

    mask: (B, Sq, Skv) (1 = keep, 0 = mask) or None; causal=True builds the
    mask in-kernel instead.  Returns (B, Sq, D) in concat-heads layout.
    """
    B, Sq = q.shape[0], q.shape[1]
    Skv = k.shape[1]
    d_k = d_model // h
    tq = _tile(Sq, tq)
    tkv = _tile(Skv, tkv)
    grid = (B, Sq // tq, Skv // tkv)
    has_mask = (mask is not None) and (not causal)

    in_specs = [
        pl.BlockSpec((1, tq, d_model), lambda b, qi, ki, c=q_col: (b, qi, c)),
        pl.BlockSpec((1, tkv, d_model), lambda b, qi, ki, c=k_col: (b, ki, c)),
        pl.BlockSpec((1, tkv, d_model), lambda b, qi, ki, c=v_col: (b, ki, c)),
    ]
    inputs = [q, k, v]
    if has_mask:
        in_specs.append(pl.BlockSpec((1, tq, tkv), lambda b, qi, ki: (b, qi, ki)))
        inputs.append(mask.astype(jnp.int8))   # 4x less mask DMA than f32

    kernel = functools.partial(
        _attention_kernel, h=h, d_k=d_k, sm_scale=1.0 / math.sqrt(d_k),
        causal=causal, has_mask=has_mask,
    )
    return pl.pallas_call(
        kernel,
        out_shape=jax.ShapeDtypeStruct((B, Sq, d_model), q.dtype),
        grid=grid,
        in_specs=in_specs,
        out_specs=pl.BlockSpec((1, tq, d_model), lambda b, qi, ki: (b, qi, 0)),
        scratch_shapes=[
            pltpu.VMEM((h, tq, 1), jnp.float32),    # running max  m
            pltpu.VMEM((h, tq, 1), jnp.float32),    # running sum  l
            pltpu.VMEM((h, tq, d_k), jnp.float32),  # running acc  (per head)
        ],
        compiler_params=pltpu.CompilerParams(
            dimension_semantics=("parallel", "parallel", "arbitrary"),
            vmem_limit_bytes=VMEM_LIMIT_BYTES,
        ),
    )(*inputs)


# ----------------------------------------------------------------------------
# Parameter fusion (done ONCE at init time, not per forward call)
# ----------------------------------------------------------------------------
def fuse_projection_params(params):
    p = dict(params)
    p["wqkv"] = jnp.concatenate([params["wq"], params["wk"], params["wv"]], axis=1)
    p["bqkv"] = jnp.concatenate([params["bq"], params["bk"], params["bv"]], axis=0)
    p["wkv"] = jnp.concatenate([params["wk"], params["wv"]], axis=1)
    p["bkv"] = jnp.concatenate([params["bk"], params["bv"]], axis=0)
    return p


# ----------------------------------------------------------------------------
# Full MultiHeadAttention forward
# ----------------------------------------------------------------------------
def multi_head_attention(query, key, value, mask, params, h, *,
                         causal=False, compute_dtype=None):
    # Identity checks BEFORE any casting (casting creates new arrays).
    self_attn = (query is key) and (key is value)
    kv_shared = key is value
    B, Sq, D = query.shape

    if compute_dtype is not None:
        # bf16 operands: full MXU rate on v6e/v7x, half the HBM/VMEM traffic.
        # Accumulation and softmax math stay f32 inside the kernels.
        query = query.astype(compute_dtype)
        key = query if self_attn else key.astype(compute_dtype)
        value = key if kv_shared else value.astype(compute_dtype)
        params = {n: p.astype(compute_dtype) for n, p in params.items()}

    if self_attn and "wqkv" in params:
        # Self-attention: one fused (D, 3D) projection — activation read once.
        qkv = linear(query.reshape(-1, D), params["wqkv"], params["bqkv"])
        qkv = qkv.reshape(B, Sq, 3 * D)
        if _col_blockable(D):
            # Feed the packed tensor straight in; BlockSpecs pick column
            # blocks 0/1/2 — no q/k/v slice copies through HBM.
            x = fused_attention(qkv, qkv, qkv, d_model=D, h=h, mask=mask,
                                causal=causal, q_col=0, k_col=1, v_col=2)
        else:
            q, k, v = qkv[..., :D], qkv[..., D:2 * D], qkv[..., 2 * D:]
            x = fused_attention(q, k, v, d_model=D, h=h, mask=mask, causal=causal)
    elif kv_shared and "wkv" in params:
        # Cross-attention with shared memory: fused (D, 2D) K/V projection.
        Skv = key.shape[1]
        q = linear(query.reshape(-1, D), params["wq"], params["bq"]).reshape(B, Sq, D)
        kv = linear(key.reshape(-1, D), params["wkv"], params["bkv"]).reshape(B, Skv, 2 * D)
        if _col_blockable(D):
            x = fused_attention(q, kv, kv, d_model=D, h=h, mask=mask,
                                causal=causal, q_col=0, k_col=0, v_col=1)
        else:
            k, v = kv[..., :D], kv[..., D:]
            x = fused_attention(q, k, v, d_model=D, h=h, mask=mask, causal=causal)
    else:
        Skv = key.shape[1]
        q = linear(query.reshape(-1, D), params["wq"], params["bq"]).reshape(B, Sq, D)
        k = linear(key.reshape(-1, D), params["wk"], params["bk"]).reshape(B, Skv, D)
        v = linear(value.reshape(-1, D), params["wv"], params["bv"]).reshape(B, Skv, D)
        x = fused_attention(q, k, v, d_model=D, h=h, mask=mask, causal=causal)

    out = linear(x.reshape(-1, D), params["wo"], params["bo"])
    return out.reshape(B, Sq, D)


# ----------------------------------------------------------------------------
# Pure-JAX reference (for correctness check)
# ----------------------------------------------------------------------------
def reference_mha(query, key, value, mask, params, h):
    B, Sq, D = query.shape
    d_k = D // h

    def proj(x, w, b):
        S = x.shape[1]
        return (x @ w + b).reshape(B, S, h, d_k).transpose(0, 2, 1, 3)

    q = proj(query, params["wq"], params["bq"])
    k = proj(key, params["wk"], params["bk"])
    v = proj(value, params["wv"], params["bv"])

    scores = jnp.einsum("bhqd,bhkd->bhqk", q, k) / math.sqrt(d_k)
    if mask is not None:
        scores = jnp.where(mask[:, None, :, :] == 0, -1e9, scores)
    p = jax.nn.softmax(scores, axis=-1)
    x = jnp.einsum("bhqk,bhkd->bhqd", p, v)
    x = x.transpose(0, 2, 1, 3).reshape(B, Sq, D)
    return x @ params["wo"] + params["bo"]


if __name__ == "__main__":
    # Keep reference and kernel f32 matmuls at the same (highest) precision so
    # the comparison measures the kernel, not XLA's default-precision choices.
    jax.config.update("jax_default_matmul_precision", "highest")

    # Small shapes consistent with the module: batch=2, seq=8, d_model=32, h=4
    B, S, D, H = 2, 8, 32, 4

    key0 = jax.random.PRNGKey(0)
    keys = jax.random.split(key0, 13)
    scale = 1.0 / math.sqrt(D)

    params = {
        "wq": jax.random.normal(keys[0], (D, D), jnp.float32) * scale,
        "bq": jax.random.normal(keys[1], (D,), jnp.float32) * 0.01,
        "wk": jax.random.normal(keys[2], (D, D), jnp.float32) * scale,
        "bk": jax.random.normal(keys[3], (D,), jnp.float32) * 0.01,
        "wv": jax.random.normal(keys[4], (D, D), jnp.float32) * scale,
        "bv": jax.random.normal(keys[5], (D,), jnp.float32) * 0.01,
        "wo": jax.random.normal(keys[6], (D, D), jnp.float32) * scale,
        "bo": jax.random.normal(keys[7], (D,), jnp.float32) * 0.01,
    }
    params = fuse_projection_params(params)   # fused QKV / KV weights, once

    x_self = jax.random.normal(keys[8], (B, S, D), jnp.float32)
    query = jax.random.normal(keys[9], (B, S, D), jnp.float32)
    key_x = jax.random.normal(keys[10], (B, S, D), jnp.float32)
    value = jax.random.normal(keys[11], (B, S, D), jnp.float32)
    memory = jax.random.normal(keys[12], (B, S, D), jnp.float32)

    # causal mask (B, Sq, Sk): 1 where attention allowed, 0 where masked
    causal_mask = jnp.broadcast_to(jnp.tril(jnp.ones((S, S), jnp.float32)), (B, S, S))
    ones_mask = jnp.ones((B, S, S), jnp.float32)

    TOL = 2e-3

    # 1) self-attention with explicit causal mask (fused QKV projection path)
    out1 = jax.block_until_ready(
        multi_head_attention(x_self, x_self, x_self, causal_mask, params, H)
    )
    ref1 = reference_mha(x_self, x_self, x_self, causal_mask, params, H)
    assert out1.shape == (B, S, D)
    assert jnp.allclose(out1, ref1, atol=TOL, rtol=TOL), (
        f"self-attn max abs err = {jnp.max(jnp.abs(out1 - ref1))}"
    )

    # 2) in-kernel causal fast path (no mask tensor in HBM) matches the same ref
    out1c = jax.block_until_ready(
        multi_head_attention(x_self, x_self, x_self, None, params, H, causal=True)
    )
    assert jnp.allclose(out1c, ref1, atol=TOL, rtol=TOL), (
        f"causal fast-path max abs err = {jnp.max(jnp.abs(out1c - ref1))}"
    )

    # 3) cross-attention with shared key/value memory (fused KV projection path)
    out2 = jax.block_until_ready(
        multi_head_attention(query, memory, memory, ones_mask, params, H)
    )
    ref2 = reference_mha(query, memory, memory, ones_mask, params, H)
    assert out2.shape == (B, S, D)
    assert jnp.allclose(out2, ref2, atol=TOL, rtol=TOL), (
        f"cross-attn (shared KV) max abs err = {jnp.max(jnp.abs(out2 - ref2))}"
    )

    # 4) fully distinct query / key / value tensors (unfused projection path)
    out3 = jax.block_until_ready(
        multi_head_attention(query, key_x, value, causal_mask, params, H)
    )
    ref3 = reference_mha(query, key_x, value, causal_mask, params, H)
    assert out3.shape == (B, S, D)
    assert jnp.allclose(out3, ref3, atol=TOL, rtol=TOL), (
        f"cross-attn (distinct) max abs err = {jnp.max(jnp.abs(out3 - ref3))}"
    )

    # 5) bf16 compute path (MXU / bandwidth perf path) — loose sanity bound
    out4 = jax.block_until_ready(
        multi_head_attention(x_self, x_self, x_self, causal_mask, params, H,
                             compute_dtype=jnp.bfloat16)
    )
    err4 = jnp.max(jnp.abs(out4.astype(jnp.float32) - ref1))
    assert out4.shape == (B, S, D)
    assert err4 < 0.25, f"bf16 path max abs err = {err4}"

    print("KERNEL_OK")
</pallas_src>

<mosaic_0001>
module attributes {stable_mosaic.version = 11 : i64} {
  func.func @_linear_kernel(%arg0: i32, %arg1: i32, %arg2: i32, %arg3: memref<16x32xf32, #tpu.memory_space<vmem>>, %arg4: memref<32x96xf32, #tpu.memory_space<vmem>>, %arg5: memref<1x96xf32, #tpu.memory_space<vmem>>, %arg6: memref<16x96xf32, #tpu.memory_space<vmem>>, %arg7: memref<16x96xf32, #tpu.memory_space<vmem>>) attributes {dimension_semantics = [#tpu.dimension_semantics<parallel>, #tpu.dimension_semantics<parallel>, #tpu.dimension_semantics<arbitrary>], iteration_bounds = array<i64: 1, 1, 1>, scalar_prefetch = 0 : i64, scratch_operands = 1 : i64, tpu.core_type = #tpu.core_type<tc>, window_params = [{transform_indices = @transform_0, window_bounds = array<i64: 16, 32>}, {transform_indices = @transform_1, window_bounds = array<i64: 32, 96>}, {transform_indices = @transform_2, window_bounds = array<i64: 1, 96>}, {transform_indices = @transform_3, window_bounds = array<i64: 16, 96>}]} {
    %c0_i32 = arith.constant 0 : i32
    %0 = arith.cmpi eq, %arg2, %c0_i32 : i32
    %1 = arith.extui %0 : i1 to i32
    %c0_i32_0 = arith.constant 0 : i32
    %2 = arith.cmpi ne, %1, %c0_i32_0 : i32
    scf.if %2 {
      %cst_10 = arith.constant 0.000000e+00 : f32
      %12 = vector.broadcast %cst_10 : f32 to vector<16x96xf32>
      %c0_11 = arith.constant 0 : index
      %c0_12 = arith.constant 0 : index
      %13 = vector.load %arg7[%c0_11, %c0_12] : memref<16x96xf32, #tpu.memory_space<vmem>>, vector<16x96xf32>
      tpu.vector_store %arg7[%c0_11, %c0_12], %12 {strides = array<i32>} : memref<16x96xf32, #tpu.memory_space<vmem>>, vector<16x96xf32>,
    } else {
    }
    %c0 = arith.constant 0 : index
    %c0_1 = arith.constant 0 : index
    %3 = vector.load %arg7[%c0, %c0_1] : memref<16x96xf32, #tpu.memory_space<vmem>>, vector<16x96xf32>
    %c0_2 = arith.constant 0 : index
    %c0_3 = arith.constant 0 : index
    %4 = vector.load %arg3[%c0_2, %c0_3] : memref<16x32xf32, #tpu.memory_space<vmem>>, vector<16x32xf32>
    %c0_4 = arith.constant 0 : index
    %c0_5 = arith.constant 0 : index
    %5 = vector.load %arg4[%c0_4, %c0_5] : memref<32x96xf32, #tpu.memory_space<vmem>>, vector<32x96xf32>
    %cst = arith.constant dense<0.000000e+00> : vector<16x96xf32>
    %6 = tpu.matmul %4, %5, %cst {dimension_numbers = #tpu.dot_dimension_numbers<[1], [0], [0], [1], [0, 0, 1, 1], [], []>, precision = #tpu.contract_precision<fp32>} : vector<16x32xf32>, vector<32x96xf32>, vector<16x96xf32> -> vector<16x96xf32>
    %7 = arith.addf %3, %6 : vector<16x96xf32>
    %c0_6 = arith.constant 0 : index
    %c0_7 = arith.constant 0 : index
    %8 = vector.load %arg7[%c0_6, %c0_7] : memref<16x96xf32, #tpu.memory_space<vmem>>, vector<16x96xf32>
    tpu.vector_store %arg7[%c0_6, %c0_7], %7 {strides = array<i32>} : memref<16x96xf32, #tpu.memory_space<vmem>>, vector<16x96xf32>,
    %c0_i32_8 = arith.constant 0 : i32
    %9 = arith.cmpi eq, %arg2, %c0_i32_8 : i32
    %10 = arith.extui %9 : i1 to i32
    %c0_i32_9 = arith.constant 0 : i32
    %11 = arith.cmpi ne, %10, %c0_i32_9 : i32
    scf.if %11 {
      %c0_10 = arith.constant 0 : index
      %c0_11 = arith.constant 0 : index
      %12 = vector.load %arg7[%c0_10, %c0_11] : memref<16x96xf32, #tpu.memory_space<vmem>>, vector<16x96xf32>
      %c0_12 = arith.constant 0 : index
      %c0_13 = arith.constant 0 : index
      %13 = vector.load %arg5[%c0_12, %c0_13] : memref<1x96xf32, #tpu.memory_space<vmem>>, vector<1x96xf32>
      %14 = vector.broadcast %13 : vector<1x96xf32> to vector<16x96xf32>
      %15 = arith.addf %12, %14 : vector<16x96xf32>
      %c0_14 = arith.constant 0 : index
      %c0_15 = arith.constant 0 : index
      %16 = vector.load %arg6[%c0_14, %c0_15] : memref<16x96xf32, #tpu.memory_space<vmem>>, vector<16x96xf32>
      tpu.vector_store %arg6[%c0_14, %c0_15], %15 {strides = array<i32>} : memref<16x96xf32, #tpu.memory_space<vmem>>, vector<16x96xf32>,
    } else {
    }
    return
  }
  func.func @transform_0(%arg0: i32, %arg1: i32, %arg2: i32) -> (i32, i32) {
    %c0_i32 = arith.constant 0 : i32
    return %arg0, %arg2 : i32, i32
  }
  func.func @transform_1(%arg0: i32, %arg1: i32, %arg2: i32) -> (i32, i32) {
    %c0_i32 = arith.constant 0 : i32
    return %arg2, %arg1 : i32, i32
  }
  func.func @transform_2(%arg0: i32, %arg1: i32, %arg2: i32) -> (i32, i32) {
    %c0_i32 = arith.constant 0 : i32
    %c0_i32_0 = arith.constant 0 : i32
    return %c0_i32, %arg1 : i32, i32
  }
  func.func @transform_3(%arg0: i32, %arg1: i32, %arg2: i32) -> (i32, i32) {
    %c0_i32 = arith.constant 0 : i32
    return %arg0, %arg1 : i32, i32
  }
}

</mosaic_0001>

<bundles_post_ra>
// kernel: tpu_custom_call.1
= control target key start
LH: loop header
LB: loop body
LE: loop exit
PB: predicated region body
PF: predicated region fallthrough
CT: control target
= control target key end

     0   :  { %8 = vsyncpa [#allocation4], 0  ;;  %s908_s0 = inlined_call_operand.hbm [shape: f32[16,32], index: 0, kind: input, shape index: {}]   ;;  %s909_s1 = inlined_call_operand.hbm [shape: f32[32,96], index: 1, kind: input, shape index: {}]   ;;  %s910_s2 = inlined_call_operand.vmem [shape: f32[1,96], index: 2, kind: input, shape index: {}]   ;;  %s911_s3 = inlined_call_operand.hbm [shape: f32[16,96], index: 3, kind: output, shape index: {}]  }
   0x1   :  { %9 = vsyncpa [#allocation7], 0 }
   0x2   :  { %10 = vsyncpa [#allocation5], 0  ;;  %s807_s12 = smov [#allocation3]  }
   0x3   :  { %s16_s13 = sshll.u32 %s807_s12, 4  ;;  %s17_s13 = int_to_ptr.vmem [resolvable:$true] %s16_s13 }
   0x4   :  { %s749_s14 = scalar_lea.vmem %s17_s13, 256  ;;  %p754_p1 = scmp.lt.s32.totalorder %s17_s13, %s17_s13 }
   0x5   :  { %p750_p0 = scmp.ne.s32.totalorder %s17_s13, %s749_s14  ;;  %p755_p2 = scmp.lt.s32.totalorder %s749_s14, %s749_s14 }
   0x7   :  { %p756_p3 = por %p755_p2, %p754_p1 }
   0x9   :  { %p757_p4 = pnand %p756_p3, %p750_p0 }
   0xb   :  { %760 = shalt.err (!%p757_p4)
}
   0xc   :  { %s808_s15 = smov 128   ;;  %s809_s16 = smov 8  }
   0xd   :  { %22 = dma.hbm_to_vmem [thread:$0]  %s908_s0, 256, %s17_s13, [#allocation4], %s808_s15, %s808_s15, %s809_s16  }
   0xe   :  { %s810_s19 = smov [#allocation6]  }
   0xf   :  { %s28_s20 = sshll.u32 %s810_s19, 4  ;;  %s29_s20 = int_to_ptr.vmem [resolvable:$true] %s28_s20 }
  0x10   :  { %s769_s21 = scalar_lea.vmem %s29_s20, 512  ;;  %p774_p6 = scmp.lt.s32.totalorder %s29_s20, %s29_s20 }
  0x11   :  { %p770_p5 = scmp.ne.s32.totalorder %s29_s20, %s769_s21  ;;  %p775_p7 = scmp.lt.s32.totalorder %s769_s21, %s769_s21 }
  0x13   :  { %p776_p8 = por %p775_p7, %p774_p6 }
  0x15   :  { %p777_p9 = pnand %p776_p8, %p770_p5 }
  0x17   :  { %780 = shalt.err (!%p777_p9)
}
  0x18   :  { %34 = dma.hbm_to_vmem [thread:$0]  %s909_s1, 512, %s29_s20, [#allocation7], %s808_s15, %s808_s15, %s809_s16  }
  0x19   :  { %801 = dma.done.wait [#allocation4], 256  }
  0x1a   :  { %802 = vsyncadd [#allocation4], 4294967040 }
  0x1b   :  { %803 = dma.done.wait [#allocation7], 512  }
  0x1c   :  { %804 = vsyncadd [#allocation7], 4294966784  ;;  %vm58_vm0 = vcmask 261120   ;;  %v57_v0 = vld [vmem:[#allocation6 + $0x18] sm:$0xff]  ;;  %v56_v1 = vld [vmem:[#allocation6 + $0x10] sm:$0xff]  ;;  %vm47_vm1 = vcmask 785408  }
  0x1d   :  { %v55_v2 = vld [vmem:[#allocation6 + $0x8] sm:$0xff]  ;;  %v845_v3 = vand.u32 4294901760, %v57_v0  ;;  %v847_v4 = vand.u32 4294901760, %v56_v1  ;;  %v54_v6 = vld [vmem:[#allocation6] sm:$0xff]  ;;  %v52_v7 = vld [vmem:[#allocation3] sm:$0xff]  ;;  %v811_v38 = vmov 0.0  }
  0x1e   :  { %v849_v5 = vand.u32 4294901760, %v55_v2  ;;  %v53_v8 = vld [vmem:[#allocation3 + $0x8] sm:$0xff]  ;;  %v851_v9 = vand.u32 4294901760, %v54_v6  ;;  %v60_v10 = vsel %vm58_vm0, %v52_v7, 0  ;;  %49 = vst.msk [vmem:[#allocation2 + $0x8] sm:$0xff] %vm47_vm1, %v811_v38  ;;  %48 = vst.msk [vmem:[#allocation2] sm:$0xff] %vm47_vm1, %v811_v38 }
  0x1f   :  { %v63_v11 = vsel %vm58_vm0, %v53_v8, 0  ;;  %669 = vmatprep.subr.mxu0 %v845_v3  ;;  %v180_v12 = vsub.f32 %v57_v0, %v845_v3  ;;  %v855_v13 = vand.u32 4294901760, %v60_v10  ;;  %v187_v15 = vsub.f32 %v56_v1, %v847_v4  ;;  %v632_v1 = vld [vmem:[%s910_s2] ss:$0 sm:$0xff]  ;;  %s812_s24 = smov [#allocation8]  }
  0x20   :  { %v857_v14 = vand.u32 4294901760, %v63_v11  ;;  %670 = vmatpush3.msra.mxu0 %v845_v3  ;;  %v194_v16 = vsub.f32 %v55_v2, %v849_v5  ;;  %v201_v17 = vsub.f32 %v54_v6, %v851_v9  ;;  %s619_s25 = sshll.u32 %s812_s24, 4  ;;  %s620_s25 = int_to_ptr.vmem [resolvable:$true] %s619_s25 }
  0x21   :  { %671 = vmatprep.subr.mxu0 %v847_v4  ;;  %v181_v18 = vand.u32 4294901760, %v180_v12  ;;  %v135_v19 = vsub.f32 %v60_v10, %v855_v13  ;;  %v188_v20 = vand.u32 4294901760, %v187_v15  ;;  %688 = vmatprep.mubr.f32.mxu1 %v855_v13  ;;  %s781_s26 = scalar_lea.vmem %s620_s25, 256  ;;  %p786_p11 = scmp.lt.s32.totalorder %s620_s25, %s620_s25 }
  0x22   :  { %v145_v21 = vsub.f32 %v63_v11, %v857_v14  ;;  %672 = vmatpush3.msra.mxu0 %v847_v4  ;;  %v195_v22 = vand.u32 4294901760, %v194_v16  ;;  %v202_v23 = vand.u32 4294901760, %v201_v17  ;;  %p782_p10 = scmp.ne.s32.totalorder %s620_s25, %s781_s26  ;;  %p787_p12 = scmp.lt.s32.totalorder %s781_s26, %s781_s26 }
  0x23   :  { %673 = vmatprep.subr.mxu0 %v849_v5  ;;  %v182_v24 = vsub.f32 %v180_v12, %v181_v18  ;;  %v136_v25 = vand.u32 4294901760, %v135_v19  ;;  %v189_v26 = vsub.f32 %v187_v15, %v188_v20 }
  0x24   :  { %v146_v27 = vand.u32 4294901760, %v145_v21  ;;  %674 = vmatpush3.msra.mxu0 %v849_v5  ;;  %v196_v28 = vsub.f32 %v194_v16, %v195_v22  ;;  %v203_v29 = vsub.f32 %v201_v17, %v202_v23  ;;  %p788_p13 = por %p787_p12, %p786_p11 }
  0x25   :  { %675 = vmatprep.subr.mxu0 %v851_v9  ;;  %v183_v30 = vand.u32 4294901760, %v182_v24  ;;  %v137_v31 = vsub.f32 %v135_v19, %v136_v25  ;;  %v190_v32 = vand.u32 4294901760, %v189_v26  ;;  %v51_v56 = vld [vmem:[#allocation2 + $0x8] sm:$0xff]  ;;  %v50_v60 = vld [vmem:[#allocation2] sm:$0xff] }
  0x26   :  { %v147_v33 = vsub.f32 %v145_v21, %v146_v27  ;;  %676 = vmatpush3.msra.mxu0 %v851_v9  ;;  %v197_v36 = vand.u32 4294901760, %v196_v28  ;;  %v204_v37 = vand.u32 4294901760, %v203_v29  ;;  %p789_p0 = pnand %p788_p13, %p782_p10 }
  0x27   :  { %680 = vmatprep.subr.mxu1 %v183_v30  ;;  %v138_v34 = vand.u32 4294901760, %v137_v31  ;;  %691 = vmatprep.subr.mxu0 %v180_v12 }
  0x28   :  { %v148_v35 = vand.u32 4294901760, %v147_v33  ;;  %681 = vmatpush3.msra.mxu1 %v183_v30 }
  0x29   :  { %677 = vmatprep.mubr.f32.mxu0 %v138_v34  ;;  %682 = vmatprep.subr.mxu1 %v190_v32 }
  0x2a   :  { %678 = vmatmul.mubr.f32.vlgmr.msra.gmra.mxu0 %v148_v35  ;;  %683 = vmatpush3.msra.mxu1 %v190_v32 }
  0x2b   :  { %692 = vmatpush3.msra.mxu0 %v180_v12  ;;  %684 = vmatprep.subr.mxu1 %v197_v36 }
  0x2c   :  { %693 = vmatprep.subr.mxu0 %v187_v15  ;;  %685 = vmatpush3.msra.mxu1 %v197_v36 }
  0x2d   :  { %694 = vmatpush3.msra.mxu0 %v187_v15  ;;  %686 = vmatprep.subr.mxu1 %v204_v37 }
  0x2e   :  { %695 = vmatprep.subr.mxu0 %v194_v16  ;;  %687 = vmatpush3.msra.mxu1 %v204_v37 }
  0x2f   :  { %696 = vmatpush3.msra.mxu0 %v194_v16  ;;  %689 = vmatmul.mubr.f32.vlgmr.msra.gmra.mxu1 %v857_v14 }
  0x30   :  { %697 = vmatprep.subr.mxu0 %v201_v17  ;;  %702 = vmatprep.subr.mxu1 %v845_v3 }
  0x31   :  { %698 = vmatpush3.msra.mxu0 %v201_v17  ;;  %699 = vmatprep.mubr.f32.mxu0 %v135_v19 }
  0x32   :  { %703 = vmatpush3.msra.mxu1 %v845_v3  ;;  %700 = vmatmul.mubr.f32.vlgmr.msra.gmra.mxu0 %v145_v21 }
  0x33   :  { %704 = vmatprep.subr.mxu1 %v847_v4  ;;  %713 = vmatprep.subr.mxu0 %v181_v18 }
  0x34   :  { %705 = vmatpush3.msra.mxu1 %v847_v4  ;;  %714 = vmatpush3.msra.mxu0 %v181_v18 }
  0x35   :  { %706 = vmatprep.subr.mxu1 %v849_v5  ;;  %715 = vmatprep.subr.mxu0 %v188_v20 }
  0x36   :  { %707 = vmatpush3.msra.mxu1 %v849_v5  ;;  %716 = vmatpush3.msra.mxu0 %v188_v20 }
  0x37   :  { %708 = vmatprep.subr.mxu1 %v851_v9  ;;  %717 = vmatprep.subr.mxu0 %v195_v22 }
  0x38   :  { %709 = vmatpush3.msra.mxu1 %v851_v9  ;;  %710 = vmatprep.mubr.f32.mxu1 %v136_v25 }
  0x39   :  { %718 = vmatpush3.msra.mxu0 %v195_v22  ;;  %711 = vmatmul.mubr.f32.vlgmr.msra.gmra.mxu1 %v146_v27 }
  0x3a   :  { %719 = vmatprep.subr.mxu0 %v202_v23  ;;  %724 = vmatprep.subr.mxu1 %v845_v3 }
  0x3b   :  { %720 = vmatpush3.msra.mxu0 %v202_v23  ;;  %721 = vmatprep.mubr.f32.mxu0 %v855_v13 }
  0x3c   :  { %725 = vmatpush3.msra.mxu1 %v845_v3  ;;  %722 = vmatmul.mubr.f32.vlgmr.msra.gmra.mxu0 %v857_v14 }
  0x3d   :  { %726 = vmatprep.subr.mxu1 %v847_v4  ;;  %732 = vmatprep.mubr.f32.mxu1 %v855_v13 }
  0x3e   :  { %727 = vmatpush3.msra.mxu1 %v847_v4 }
  0x3f   :  { %728 = vmatprep.subr.mxu1 %v849_v5 }
  0x40   :  { %729 = vmatpush3.msra.mxu1 %v849_v5 }
  0x41   :  { %730 = vmatprep.subr.mxu1 %v851_v9 }
  0x42   :  { %731 = vmatpush3.msra.mxu1 %v851_v9 }
  0x43   :  { %733 = vmatmul.mubr.f32.vlgmr.msra.gmra.mxu1 %v857_v14 }
  0xea   :  { %v679_v39 = vpop.f32.mrf.mxu0 }
  0xec   :  { %v140_v40 = vpop.f32.mrf.mxu0 }
  0xef   :  { %v690_v41 = vpop.f32.mrf.mxu1 }
  0xf0   :  { %v248_v44 = vadd.f32 %v690_v41, %v679_v39 }
  0xf1   :  { %v241_v42 = vpop.f32.mrf.mxu1 }
  0xf2   :  { %v701_v43 = vpop.f32.mrf.mxu0  ;;  %v242_v46 = vadd.f32 %v241_v42, %v140_v40 }
  0xf3   :  { %v335_v48 = vadd.f32 %v701_v43, %v248_v44 }
  0xf4   :  { %v327_v47 = vpop.f32.mrf.mxu0 }
  0xf5   :  { %v328_v51 = vadd.f32 %v327_v47, %v242_v46 }
  0xf9   :  { %v712_v45 = vpop.f32.mrf.mxu1 }
  0xfa   :  { %v420_v52 = vadd.f32 %v712_v45, %v335_v48 }
  0xfb   :  { %v411_v49 = vpop.f32.mrf.mxu1 }
  0xfc   :  { %v723_v50 = vpop.f32.mrf.mxu0  ;;  %v412_v53 = vadd.f32 %v411_v49, %v328_v51 }
  0xfd   :  { %v509_v55 = vadd.f32 %v723_v50, %v420_v52 }
  0xfe   :  { %v502_v54 = vpop.f32.mrf.mxu0 }
  0xff   :  { %v503_v58 = vadd.f32 %v502_v54, %v412_v53 }
 0x103   :  { %v734_v57 = vpop.f32.mrf.mxu1 }
 0x104   :  { %v590_v59 = vadd.f32 %v734_v57, %v509_v55 }
 0x105   :  { %v583_v61 = vpop.f32.mrf.mxu1 }
 0x106   :  { %v594_v62 = vadd.f32 %v590_v59, %v51_v56  ;;  %v584_v63 = vadd.f32 %v583_v61, %v503_v58 }
 0x108   :  { %597 = vst.msk [vmem:[#allocation2 + $0x8] sm:$0xff] %vm47_vm1, %v594_v62  ;;  %v593_v0 = vadd.f32 %v584_v63, %v50_v60 }
 0x10a   :  { %596 = vst.msk [vmem:[#allocation2] sm:$0xff] %vm47_vm1, %v593_v0 }
 0x10f   :  { %v602_v2 = vld [vmem:[#allocation2 + $0x8] sm:$0xff] }
 0x110   :  { %v611_v3 = vadd.f32 %v632_v1, %v602_v2 }
 0x111   :  { %v601_v4 = vld [vmem:[#allocation2] sm:$0xff] }
 0x112   :  { %v610_v5 = vadd.f32 %v632_v1, %v601_v4  ;;  %613 = vst.msk [vmem:[#allocation8 + $0x8] sm:$0xff] %vm47_vm1, %v611_v3 }
 0x114   :  { %612 = vst.msk [vmem:[#allocation8] sm:$0xff] %vm47_vm1, %v610_v5 }
 0x115   :  { %792 = shalt.err (!%p789_p0)
}
 0x116   :  { %625 = dma.vmem_to_hbm [thread:$0]  %s620_s25, 256, %s911_s3, [#allocation5], %s808_s15, %s808_s15, %s809_s16  }
 0x117   :  { %805 = dma.done.wait [#allocation5], 256  }
 0x118   :  { %806 = vsyncadd [#allocation5], 4294967040 }
 0x119   :  { %629 = vsyncpa [#allocation4], 1 }
 0x11a   :  { %630 = vsyncpa [#allocation7], 1 }
 0x11b   :  { %631 = vsyncpa [#allocation5], 1 }

</bundles_post_ra>
